<compile_context>
chip_gen: v7x
topology: tpu7x:2x2x1
jax: 0.10.0
libtpu: 0.0.40
codegen_flags: <defaults>
</compile_context>

<pallas_src>
import functools

import jax
import jax.numpy as jnp
from jax.experimental import pallas as pl
from jax.experimental.pallas import tpu as pltpu


def _pair_prob_kernel(params_ref, us_ref, vs_ref, p_ref):
    """Per-tile euclidean distance + link probability, lane-dense layout.

    params_ref : SMEM (2,) float32  -> [beta, beta * R]
    us_ref     : VMEM (D, TN) float32   (pair index on lanes)
    vs_ref     : VMEM (D, TN) float32
    p_ref      : VMEM (1, TN) float32
    """
    beta = params_ref[0]
    beta_r = params_ref[1]  # beta * R, hoisted in the wrapper

    diff = us_ref[...] - vs_ref[...]                                  # (D, TN)
    dist = jnp.sqrt(jnp.sum(diff * diff, axis=0, keepdims=True))      # (1, TN)

    # p = exp(-logaddexp(0, beta*(dist - R))) == 1 / (1 + exp(beta*dist - beta*R))
    # exp overflow -> inf -> reciprocal 0, which matches the reference limit.
    z = beta * dist - beta_r
    p_ref[...] = pl.reciprocal(1.0 + jnp.exp(z), approx=False)


@functools.partial(jax.jit, static_argnames=("tile_n",))
def euclidean_calc_probability(table, pairs, beta, R, *, tile_n=2048):
    """Pallas implementation of Euclidean.calc_probability (e_dist + link prob).

    table : (n_nodes, n_dim) float32  (nn.Embedding weight)
    pairs : (N, 2) int32 node-index pairs
    returns p : (N,) float32
    """
    n_pairs = pairs.shape[0]
    n_dim = table.shape[1]

    # Lane-multiple tile, shrunk for small inputs (all static at trace time).
    tile_n = max(128, (tile_n // 128) * 128)
    tile = min(tile_n, ((n_pairs + 127) // 128) * 128)
    n_pad = ((n_pairs + tile - 1) // tile) * tile
    pad = n_pad - n_pairs

    # Pad only the cheap index array (padded rows point at node 0 and are
    # sliced away after the kernel).
    pairs_p = jnp.pad(pairs, ((0, pad), (0, 0)))

    table_f = table.astype(jnp.float32)
    # Embedding gather (nn.Embedding lookup) — kept in XLA, but produced
    # transposed so the pair index sits on the 128-lane axis: (n_dim, n_pad).
    us_t = jnp.take(table_f, pairs_p[:, 0], axis=0).T
    vs_t = jnp.take(table_f, pairs_p[:, 1], axis=0).T

    params = jnp.array([beta, beta * R], dtype=jnp.float32)

    p_pad = pl.pallas_call(
        _pair_prob_kernel,
        out_shape=jax.ShapeDtypeStruct((1, n_pad), jnp.float32),
        grid=(n_pad // tile,),
        in_specs=[
            pl.BlockSpec(memory_space=pltpu.MemorySpace.SMEM),    # [beta, beta*R]
            pl.BlockSpec((n_dim, tile), lambda i: (0, i)),        # us^T tile
            pl.BlockSpec((n_dim, tile), lambda i: (0, i)),        # vs^T tile
        ],
        out_specs=pl.BlockSpec((1, tile), lambda i: (0, i)),
        compiler_params=pltpu.CompilerParams(
            dimension_semantics=("parallel",)),
    )(params, us_t, vs_t)

    return p_pad[0, :n_pairs]


def _reference(table, pairs, beta, R):
    """Pure-JAX reference mirroring the PyTorch code exactly."""
    us = jnp.take(table, pairs[:, 0], axis=0)
    vs = jnp.take(table, pairs[:, 1], axis=0)
    dist = jnp.sqrt(jnp.sum((us - vs) ** 2, axis=1))               # e_dist
    return jnp.exp(-jnp.logaddexp(0.0, beta * (dist - R)))         # calc_probability


if __name__ == "__main__":
    # Module hyperparameters (Euclidean.__init__ signature).
    n_nodes = 32
    n_dim = 4
    R = 2.0
    init_range = 0.01
    beta = 1.0          # referenced by calc_probability; defined in subclasses
    n_pairs = 8

    key = jax.random.PRNGKey(0)
    k_tab, k_pairs = jax.random.split(key)

    # Deterministic parameter init: nn.Embedding(n_nodes, n_dim) weights,
    # uniform in [-init_range, init_range] as the subclasses do.
    table = jax.random.uniform(
        k_tab, (n_nodes, n_dim), minval=-init_range, maxval=init_range,
        dtype=jnp.float32)

    # Example node-index pairs (what `samples` / `pairs` are in the module).
    pairs = jax.random.randint(k_pairs, (n_pairs, 2), 0, n_nodes, dtype=jnp.int32)

    p = euclidean_calc_probability(table, pairs, beta, R)
    p = jax.block_until_ready(p)

    p_ref = _reference(table, pairs, beta, R)
    assert p.shape == (n_pairs,)
    assert jnp.allclose(p, p_ref, rtol=1e-5, atol=1e-6), (p, p_ref)

    print("KERNEL_OK")
</pallas_src>

<mosaic_0001>
module attributes {stable_mosaic.version = 11 : i64} {
  func.func @_pair_prob_kernel(%arg0: i32, %arg1: memref<2xf32, #tpu.memory_space<smem>>, %arg2: memref<4x128xf32, #tpu.memory_space<vmem>>, %arg3: memref<4x128xf32, #tpu.memory_space<vmem>>, %arg4: memref<1x128xf32, #tpu.memory_space<vmem>>) attributes {dimension_semantics = [#tpu.dimension_semantics<parallel>], iteration_bounds = array<i64: 1>, scalar_prefetch = 0 : i64, scratch_operands = 0 : i64, tpu.core_type = #tpu.core_type<tc>, window_params = [{transform_indices = @transform_0, window_bounds = array<i64: 2>}, {transform_indices = @transform_1, window_bounds = array<i64: 4, 128>}, {transform_indices = @transform_2, window_bounds = array<i64: 4, 128>}, {transform_indices = @transform_3, window_bounds = array<i64: 1, 128>}]} {
    %c0 = arith.constant 0 : index
    %0 = memref.load %arg1[%c0] : memref<2xf32, #tpu.memory_space<smem>>
    %c1 = arith.constant 1 : index
    %1 = memref.load %arg1[%c1] : memref<2xf32, #tpu.memory_space<smem>>
    %c0_0 = arith.constant 0 : index
    %c0_1 = arith.constant 0 : index
    %2 = vector.load %arg2[%c0_0, %c0_1] : memref<4x128xf32, #tpu.memory_space<vmem>>, vector<4x128xf32>
    %c0_2 = arith.constant 0 : index
    %c0_3 = arith.constant 0 : index
    %3 = vector.load %arg3[%c0_2, %c0_3] : memref<4x128xf32, #tpu.memory_space<vmem>>, vector<4x128xf32>
    %4 = arith.subf %2, %3 : vector<4x128xf32>
    %5 = arith.mulf %4, %4 : vector<4x128xf32>
    %cst = arith.constant dense<0.000000e+00> : vector<128xf32>
    %6 = vector.multi_reduction <add>, %5, %cst [0] : vector<4x128xf32> to vector<128xf32>
    %7 = vector.shape_cast %6 : vector<128xf32> to vector<1x128xf32>
    %8 = math.sqrt %7 : vector<1x128xf32>
    %9 = vector.broadcast %0 : f32 to vector<1x128xf32>
    %10 = arith.mulf %9, %8 : vector<1x128xf32>
    %11 = vector.broadcast %1 : f32 to vector<1x128xf32>
    %12 = arith.subf %10, %11 : vector<1x128xf32>
    %13 = math.exp %12 : vector<1x128xf32>
    %cst_4 = arith.constant 1.000000e+00 : f32
    %14 = vector.broadcast %cst_4 : f32 to vector<1x128xf32>
    %15 = arith.addf %14, %13 : vector<1x128xf32>
    %16 = tpu.reciprocal %15 : vector<1x128xf32> -> vector<1x128xf32>
    %c0_5 = arith.constant 0 : index
    %c0_6 = arith.constant 0 : index
    %17 = vector.load %arg4[%c0_5, %c0_6] : memref<1x128xf32, #tpu.memory_space<vmem>>, vector<1x128xf32>
    tpu.vector_store %arg4[%c0_5, %c0_6], %16 {strides = array<i32>} : memref<1x128xf32, #tpu.memory_space<vmem>>, vector<1x128xf32>,
    return
  }
  func.func @transform_0(%arg0: i32) -> i32 {
    %c0_i32 = arith.constant 0 : i32
    %c0_i32_0 = arith.constant 0 : i32
    return %c0_i32 : i32
  }
  func.func @transform_1(%arg0: i32) -> (i32, i32) {
    %c0_i32 = arith.constant 0 : i32
    %c0_i32_0 = arith.constant 0 : i32
    return %c0_i32, %arg0 : i32, i32
  }
  func.func @transform_2(%arg0: i32) -> (i32, i32) {
    %c0_i32 = arith.constant 0 : i32
    %c0_i32_0 = arith.constant 0 : i32
    return %c0_i32, %arg0 : i32, i32
  }
  func.func @transform_3(%arg0: i32) -> (i32, i32) {
    %c0_i32 = arith.constant 0 : i32
    %c0_i32_0 = arith.constant 0 : i32
    return %c0_i32, %arg0 : i32, i32
  }
}

</mosaic_0001>

<bundles_post_ra>
// kernel: euclidean_calc_probability.1
= control target key start
LH: loop header
LB: loop body
LE: loop exit
PB: predicated region body
PF: predicated region fallthrough
CT: control target
= control target key end

     0   :  { %8 = vsyncpa [#allocation3], 0  ;;  %s117_s0 = inlined_call_operand.vmem [shape: f32[2], index: 0, kind: input, shape index: {}]   ;;  %s118_s1 = inlined_call_operand.vmem [shape: f32[4,128], index: 1, kind: input, shape index: {}]   ;;  %s119_s2 = inlined_call_operand.vmem [shape: f32[4,128], index: 2, kind: input, shape index: {}]   ;;  %s120_s3 = inlined_call_operand.vmem [shape: f32[1,128], index: 3, kind: output, shape index: {}]  }
   0x1   :  { %s15_s14 = sshll.u32 %s117_s0, 4  ;;  %s16_s14 = int_to_ptr.vmem [resolvable:$true] %s15_s14 }
   0x2   :  { %s70_s15 = scalar_lea.vmem %s16_s14, 16  ;;  %p75_p1 = scmp.lt.s32.totalorder %s16_s14, %s16_s14 }
   0x3   :  { %p71_p0 = scmp.ne.s32.totalorder %s16_s14, %s70_s15  ;;  %p76_p2 = scmp.lt.s32.totalorder %s70_s15, %s70_s15 }
   0x5   :  { %p77_p3 = por %p76_p2, %p75_p1 }
   0x7   :  { %p78_p4 = pnand %p77_p3, %p71_p0 }
   0x9   :  { %81 = shalt.err (!%p78_p4)
}
   0xa   :  { %s84_s16 = smov [#allocation2]  }
   0xb   :  { %18 = dma.vmem_to_smem %s16_s14, 16, %s84_s16, [#allocation3]  }
   0xc   :  { %82 = dma.done.wait [#allocation3], 16  }
   0xd   :  { %83 = vsyncadd [#allocation3], 4294967280 }
   0xe   :  { %26 = sfence }
   0xf   :  { %v29_v0 = vld [vmem:[%s118_s1] sm:$0xf]  ;;  %vm33_vm0 = vcmask 1043456   ;;  %s27_s0 = sld [smem:[#allocation2]]  ;;  %s62_s21 = sld [smem:[#allocation2 + $0x1]] }
  0x10   :  { %v30_v1 = vld [vmem:[%s119_s2] sm:$0xf] }
  0x11   :  { %v31_v2 = vsub.f32 %v29_v0, %v30_v1 }
  0x13   :  { %v32_v3 = vmul.f32 %v31_v2, %v31_v2 }
  0x15   :  { %v34_v4 = vsel %vm33_vm0, %v32_v3, 0.0  ;;  %v48_v14 = vstv %s27_s0  ;;  %v50_v17 = vstv %s62_s21 }
  0x16   :  { %v35_v5 = vrot.slane %v34_v4, 4 }
  0x18   :  { %v36_v6 = vadd.f32 %v35_v5, %v34_v4 }
  0x1a   :  { %v37_v7 = vrot.slane %v36_v6, 2 }
  0x1c   :  { %v38_v8 = vadd.f32 %v37_v7, %v36_v6 }
  0x1e   :  { %v39_v9 = vrot.slane %v38_v8, 1 }
  0x20   :  { %v40_v10 = vadd.f32 %v39_v9, %v38_v8 }
  0x22   :  { %64 = vrsqrt.f32 %v40_v10  ;;  %vm43_vm1 = vcmp.eq.f32.partialorder %v40_v10, inf  ;;  %v46_v12 = vand.u32 2147483648, %v40_v10  ;;  %vm45_vm2 = vcmp.eq.f32.partialorder %v40_v10, 0.0 }
  0x2c   :  { %v65_v11 = vpop.eup %64 }
  0x2d   :  { %v42_v13 = vmul.f32 %v65_v11, %v40_v10 }
  0x2f   :  { %v44_v15 = vsel %vm43_vm1, %v40_v10, %v42_v13 }
  0x30   :  { %v47_v16 = vsel %vm45_vm2, %v46_v12, %v44_v15 }
  0x31   :  { %v49_v18 = vmul.f32 %v48_v14, %v47_v16 }
  0x33   :  { %v51_v19 = vsub.f32 %v49_v18, %v50_v17 }
  0x35   :  { %v52_v20 = vmul.f32 1.442695, %v51_v19 }
  0x37   :  { %66 = vpow2.f32 %v52_v20 }
  0x41   :  { %v67_v21 = vpop.eup %66 }
  0x42   :  { %v54_v22 = vadd.f32 1.0, %v67_v21 }
  0x44   :  { %68 = vrcp.f32 %v54_v22 }
  0x4e   :  { %v69_v23 = vpop.eup %68 }
  0x4f   :  { %56 = vst [vmem:[%s120_s3] sm:$0x1] %v69_v23 }
  0x50   :  { %61 = vsyncpa [#allocation3], 1 }

</bundles_post_ra>
